<compile_context>
chip_gen: v6e
topology: v6e:2x2x1
jax: 0.10.0
libtpu: 0.0.40
codegen_flags: <defaults>
</compile_context>

<pallas_src>
import functools

import jax
import jax.numpy as jnp
from jax import lax
from jax.experimental import pallas as pl
from jax.experimental.pallas import tpu as pltpu

LANE = 128
TARGET_BLOCK_BYTES = 8 * 1024 * 1024    # per-step DMA target
MAX_BLOCK_F32_BYTES = 8 * 1024 * 1024   # cap on the in-kernel f32 working copy
VMEM_LIMIT_BYTES = 48 * 1024 * 1024     # < 64 MiB physical VMEM on v7x


def _round_up(x, m):
    return ((x + m - 1) // m) * m


def _lane_fold(x, groups, lane=LANE):
    """Reduce (R, groups*lane) -> (R, lane) by pairwise lane-group adds.

    Only lane-aligned static slices + VALU adds (groups-1 of them): no
    cross-lane (XLU) reduce and no reshape that would force a sublane relayout.
    """
    carry = None
    while groups > 1:
        if groups % 2 == 1:
            tail = x[:, (groups - 1) * lane: groups * lane]
            carry = tail if carry is None else carry + tail
            groups -= 1
        half = groups // 2
        x = x[:, : half * lane] + x[:, half * lane: groups * lane]
        groups = half
    return x if carry is None else x + carry


def _row_sum_kernel(x_ref, o_ref, *, hw, tl, c_blocks, cb_per_p):
    """Accumulate lane-dense per-row partial sums of one (tr, tl) block."""
    j = pl.program_id(2)                      # position inside this hw split
    cb = pl.program_id(1) * cb_per_p + j      # global column-block index

    @pl.when(j == 0)
    def _init():
        o_ref[...] = jnp.zeros_like(o_ref)

    groups = tl // LANE

    def _accumulate(x):
        o_ref[...] += _lane_fold(x, groups)

    if hw % tl == 0:
        # Lane-aligned input: no masking code is ever generated.
        _accumulate(x_ref[...].astype(jnp.float32))
    else:
        last = c_blocks - 1

        @pl.when(cb != last)
        def _full_block():
            _accumulate(x_ref[...].astype(jnp.float32))

        @pl.when(cb == last)
        def _tail_block():
            # Only the single ragged tail block pays for iota+compare+select.
            x = x_ref[...].astype(jnp.float32)
            limit = hw - cb * tl
            col = lax.broadcasted_iota(jnp.int32, x.shape, 1)
            # Select 0.0 (not multiply) so garbage/NaN lanes cannot leak.
            _accumulate(jnp.where(col < limit, x, 0.0))


def evolution_area(mask_score, class_weight, *,
                   min_pallas_elements=1 << 18,
                   target_block_bytes=TARGET_BLOCK_BYTES):
    """sum(class_weight[c] * mask_score[n, c, h, w]) with the hot reduction in Pallas."""
    n, c, h, w = mask_score.shape
    nc, hw = n * c, h * w

    cw_arr = jnp.asarray(class_weight)
    out_dtype = jnp.result_type(mask_score.dtype, cw_arr.dtype)
    cw = cw_arr.astype(jnp.float32).reshape(-1)
    if cw.size == 1:
        cw = jnp.broadcast_to(cw, (c,))

    # Fallback: non-(scalar|per-channel) weight layouts, or inputs so small
    # that pallas_call launch overhead dominates -> let XLA fuse it.
    if cw.shape[0] != c or nc * hw < min_pallas_elements:
        res = jnp.sum(cw_arr.astype(jnp.float32) * mask_score.astype(jnp.float32))
        return res.astype(out_dtype)

    x2d = mask_score.reshape(nc, hw)            # free view of contiguous NCHW

    itemsize = jnp.dtype(mask_score.dtype).itemsize
    row_mult = {4: 8, 2: 16, 1: 32}.get(itemsize, 8)   # min sublane tile / dtype

    nc_pad = _round_up(nc, row_mult)
    hw_pad = _round_up(hw, LANE)

    # Byte-based block sizing, with an element cap bounding the f32 working set.
    target_elems = max(LANE * row_mult,
                       min(target_block_bytes // itemsize, MAX_BLOCK_F32_BYTES // 4))

    tr = min(nc_pad, 512)
    tl = min(hw_pad, max(LANE, _round_up(target_elems // tr, LANE)))

    # Prefer a tl (multiple of 128, within 2x of target) that exactly divides hw
    # so lane-aligned inputs never generate the masked-tail path at all.
    if hw % tl != 0 and hw % LANE == 0:
        for g in range(tl // LANE, max(tl // (2 * LANE), 1) - 1, -1):
            if hw % (g * LANE) == 0:
                tl = g * LANE
                break

    tr = min(nc_pad, max(row_mult, _round_up(target_elems // tl, row_mult)))

    r_blocks = pl.cdiv(nc, tr)
    c_blocks = pl.cdiv(hw, tl)

    # Guarantee >= 2 blocks on a parallel axis (v7x has 2 TensorCores): if the
    # row axis has a single block, split the hw blocks 2-way when that split
    # is exact (keeps the grid rectangular with no out-of-range block indices).
    p_splits = 1
    if r_blocks == 1 and c_blocks >= 2:
        if c_blocks % 2 == 0:
            p_splits = 2
        else:
            alt_tl = _round_up(pl.cdiv(hw, c_blocks + 1), LANE)
            alt_cb = pl.cdiv(hw, alt_tl)
            if alt_cb >= 2 and alt_cb % 2 == 0:
                tl, c_blocks, p_splits = alt_tl, alt_cb, 2
    cb_per_p = c_blocks // p_splits

    kernel = functools.partial(_row_sum_kernel, hw=hw, tl=tl,
                               c_blocks=c_blocks, cb_per_p=cb_per_p)

    out_rows = r_blocks * tr
    out_cols = p_splits * LANE

    cost = pl.CostEstimate(
        flops=nc * hw,
        transcendentals=0,
        bytes_accessed=nc * hw * itemsize + out_rows * out_cols * 4,
    )

    row_sums = pl.pallas_call(
        kernel,
        out_shape=jax.ShapeDtypeStruct((out_rows, out_cols), jnp.float32),
        grid_spec=pltpu.PrefetchScalarGridSpec(
            num_scalar_prefetch=0,
            grid=(r_blocks, p_splits, cb_per_p),
            in_specs=[pl.BlockSpec((tr, tl),
                                   lambda i, p, j: (i, p * cb_per_p + j))],
            out_specs=pl.BlockSpec((tr, LANE), lambda i, p, j: (i, p)),
        ),
        compiler_params=pltpu.CompilerParams(
            dimension_semantics=("parallel", "parallel", "arbitrary"),
            vmem_limit_bytes=VMEM_LIMIT_BYTES,
        ),
        cost_estimate=cost,
    )(x2d)

    # Glue (O(N*C + C) work). NOTE: rows >= nc may hold garbage from padded
    # edge blocks -- slice them off before anything else.
    per_row = row_sums[:nc].sum(axis=1)
    channel_sums = per_row.reshape(n, c).sum(axis=0)
    return jnp.dot(channel_sums, cw).astype(out_dtype)


if __name__ == "__main__":
    key = jax.random.PRNGKey(0)
    k1, k2, k3, k4, k5, k6 = jax.random.split(key, 6)

    # 1) Primary small-shape test (NCHW mask_score, per-channel weight);
    #    force the Pallas path so the kernel actually runs at this size.
    mask_score = jax.random.uniform(k1, (2, 4, 16, 16), dtype=jnp.float32)
    class_weight = jax.random.uniform(k2, (4,), dtype=jnp.float32)

    result = evolution_area(mask_score, class_weight, min_pallas_elements=0)
    jax.block_until_ready(result)
    ref = jnp.sum(class_weight[None, :, None, None] * mask_score)
    assert jnp.allclose(result, ref, rtol=1e-5, atol=1e-5), (result, ref)

    # 2) Ragged-shape test (N*C not a multiple of 8, H*W not a multiple of 128)
    #    exercising the gated in-kernel tail masking (no padding copies).
    ms2 = jax.random.uniform(k3, (3, 5, 17, 23), dtype=jnp.float32)
    cw2 = jax.random.uniform(k4, (5,), dtype=jnp.float32)
    res2 = evolution_area(ms2, cw2, min_pallas_elements=0)
    jax.block_until_ready(res2)
    ref2 = jnp.sum(cw2[None, :, None, None] * ms2)
    assert jnp.allclose(res2, ref2, rtol=1e-5, atol=1e-5), (res2, ref2)

    # 3) Tiny block size override to exercise the multi-block accumulator,
    #    the 2-way parallel hw split, and the last-block mask gating together.
    ms3 = jax.random.uniform(k5, (1, 3, 24, 40), dtype=jnp.float32)
    cw3 = jax.random.uniform(k6, (3,), dtype=jnp.float32)
    res3 = evolution_area(ms3, cw3, min_pallas_elements=0, target_block_bytes=4096)
    jax.block_until_ready(res3)
    ref3 = jnp.sum(cw3[None, :, None, None] * ms3)
    assert jnp.allclose(res3, ref3, rtol=1e-5, atol=1e-5), (res3, ref3)

    print("KERNEL_OK")
</pallas_src>

<mosaic_0001>
module attributes {stable_mosaic.version = 11 : i64} {
  func.func @_row_sum_kernel(%arg0: i32, %arg1: i32, %arg2: i32, %arg3: memref<8x256xf32, #tpu.memory_space<vmem>>, %arg4: memref<8x128xf32, #tpu.memory_space<vmem>>) attributes {dimension_semantics = [#tpu.dimension_semantics<parallel>, #tpu.dimension_semantics<parallel>, #tpu.dimension_semantics<arbitrary>], iteration_bounds = array<i64: 1, 1, 1>, scalar_prefetch = 0 : i64, scratch_operands = 0 : i64, tpu.core_type = #tpu.core_type<tc>, window_params = [{transform_indices = @transform_0, window_bounds = array<i64: 8, 256>}, {transform_indices = @transform_1, window_bounds = array<i64: 8, 128>}]} {
    %c0_i32 = arith.constant 0 : i32
    %0 = arith.cmpi eq, %arg2, %c0_i32 : i32
    %1 = arith.extui %0 : i1 to i32
    %c0_i32_0 = arith.constant 0 : i32
    %2 = arith.cmpi ne, %1, %c0_i32_0 : i32
    scf.if %2 {
      %cst = arith.constant 0.000000e+00 : f32
      %10 = vector.broadcast %cst : f32 to vector<8x128xf32>
      %c0_6 = arith.constant 0 : index
      %c0_7 = arith.constant 0 : index
      %11 = vector.load %arg4[%c0_6, %c0_7] : memref<8x128xf32, #tpu.memory_space<vmem>>, vector<8x128xf32>
      tpu.vector_store %arg4[%c0_6, %c0_7], %10 {strides = array<i32>} : memref<8x128xf32, #tpu.memory_space<vmem>>, vector<8x128xf32>,
    } else {
    }
    %c0 = arith.constant 0 : index
    %c0_1 = arith.constant 0 : index
    %3 = vector.load %arg3[%c0, %c0_1] : memref<8x256xf32, #tpu.memory_space<vmem>>, vector<8x256xf32>
    %c0_2 = arith.constant 0 : index
    %c0_3 = arith.constant 0 : index
    %4 = vector.load %arg4[%c0_2, %c0_3] : memref<8x128xf32, #tpu.memory_space<vmem>>, vector<8x128xf32>
    %5 = vector.extract_strided_slice %3 {offsets = [0, 0], sizes = [8, 128], strides = [1, 1]} : vector<8x256xf32> to vector<8x128xf32>
    %6 = vector.extract_strided_slice %3 {offsets = [0, 128], sizes = [8, 128], strides = [1, 1]} : vector<8x256xf32> to vector<8x128xf32>
    %7 = arith.addf %5, %6 : vector<8x128xf32>
    %8 = arith.addf %4, %7 : vector<8x128xf32>
    %c0_4 = arith.constant 0 : index
    %c0_5 = arith.constant 0 : index
    %9 = vector.load %arg4[%c0_4, %c0_5] : memref<8x128xf32, #tpu.memory_space<vmem>>, vector<8x128xf32>
    tpu.vector_store %arg4[%c0_4, %c0_5], %8 {strides = array<i32>} : memref<8x128xf32, #tpu.memory_space<vmem>>, vector<8x128xf32>,
    return
  }
  func.func @transform_0(%arg0: i32, %arg1: i32, %arg2: i32) -> (i32, i32) {
    %c1_i32 = arith.constant 1 : i32
    %0 = arith.muli %arg1, %c1_i32 : i32
    %1 = arith.addi %0, %arg2 : i32
    %c0_i32 = arith.constant 0 : i32
    return %arg0, %1 : i32, i32
  }
  func.func @transform_1(%arg0: i32, %arg1: i32, %arg2: i32) -> (i32, i32) {
    %c0_i32 = arith.constant 0 : i32
    return %arg0, %arg1 : i32, i32
  }
}

</mosaic_0001>

<bundles_post_ra>
// kernel: tpu_custom_call.1
= control target key start
LH: loop header
LB: loop body
LE: loop exit
PB: predicated region body
PF: predicated region fallthrough
CT: control target
= control target key end

     0   :  { %6 = vsyncpa [#allocation3], 0  ;;  %s118_s0 = inlined_call_operand.hbm [shape: f32[8,256], index: 0, kind: input, shape index: {}]   ;;  %s119_s1 = inlined_call_operand.hbm [shape: f32[8,128], index: 1, kind: output, shape index: {}]  }
   0x1   :  { %7 = vsyncpa [#allocation4], 0  ;;  %s100_s6 = smov [#allocation2]  }
   0x2   :  { %s18_s7 = sshll.u32 %s100_s6, 4  ;;  %s19_s7 = int_to_ptr.vmem [resolvable:$true] %s18_s7 }
   0x3   :  { %s64_s8 = scalar_lea.vmem %s19_s7, 256  ;;  %p69_p1 = scmp.lt.s32.totalorder %s19_s7, %s19_s7 }
   0x4   :  { %p65_p0 = scmp.ne.s32.totalorder %s19_s7, %s64_s8  ;;  %p70_p2 = scmp.lt.s32.totalorder %s64_s8, %s64_s8 }
   0x6   :  { %p71_p3 = por %p70_p2, %p69_p1 }
   0x8   :  { %p72_p4 = pnand %p71_p3, %p65_p0 }
   0xa   :  { %75 = shalt.err (!%p72_p4)
}
   0xb   :  { %21 = dma.hbm_to_vmem [thread:$0]  %s118_s0, 256, %s19_s7, [#allocation3]  }
   0xc   :  { %96 = dma.done.wait [#allocation3], 256  }
   0xd   :  { %97 = vsyncadd [#allocation3], 4294967040  ;;  %v32_v0 = vld [vmem:[#allocation2] sm:$0xff]  ;;  %v33_v1 = vld [vmem:[#allocation2 + $0x8] sm:$0xff]  ;;  %s101_s11 = smov [#allocation5]  }
   0xe   :  { %s44_s12 = sshll.u32 %s101_s11, 4  ;;  %v35_v2 = vadd.f32 %v33_v1, %v32_v0  ;;  %s45_s12 = int_to_ptr.vmem [resolvable:$true] %s44_s12 }
   0xf   :  { %s76_s13 = scalar_lea.vmem %s45_s12, 128  ;;  %p81_p6 = scmp.lt.s32.totalorder %s45_s12, %s45_s12 }
  0x10   :  { %37 = vst [vmem:[#allocation5] sm:$0xff] %v35_v2  ;;  %p77_p5 = scmp.ne.s32.totalorder %s45_s12, %s76_s13  ;;  %p82_p7 = scmp.lt.s32.totalorder %s76_s13, %s76_s13 }
  0x12   :  { %p83_p8 = por %p82_p7, %p81_p6 }
  0x14   :  { %p84_p9 = pnand %p83_p8, %p77_p5 }
  0x16   :  { %87 = shalt.err (!%p84_p9)
}
  0x17   :  { %47 = dma.vmem_to_hbm [thread:$0]  %s45_s12, 128, %s119_s1, [#allocation4]  }
  0x18   :  { %98 = dma.done.wait [#allocation4], 128  }
  0x19   :  { %99 = vsyncadd [#allocation4], 4294967168 }
  0x1a   :  { %51 = vsyncpa [#allocation3], 1 }
  0x1b   :  { %52 = vsyncpa [#allocation4], 1 }

</bundles_post_ra>
